<compile_context>
chip_gen: v7x
topology: tpu7x:2x2x1
jax: 0.10.0
libtpu: 0.0.40
codegen_flags: <defaults>
</compile_context>

<pallas_src>
import functools

import jax
import jax.numpy as jnp
from jax.experimental import pallas as pl
from jax.experimental.pallas import tpu as pltpu


def _center_reg_kernel(n_rows, ragged, margin_ref, dist_ref, mask_ref, out_ref):
    # margin_ref: SMEM (1,)        f32    -- the (non-trainable) margin parameter
    # dist_ref  : VMEM (T, C)      native -- row tile of the distance matrix
    # mask_ref  : VMEM (1, 1, T)   f32    -- lane-dense unknown-row mask (0/1)
    # out_ref   : VMEM (1, 1, 1)   f32    -- this tile's partial sum
    m = margin_ref[0]
    m2 = m * m

    d = dist_ref[...].astype(jnp.float32)                 # cast in-regs only
    vals = jnp.maximum(m2 - d * d, 0.0)                   # relu(margin^2 - d^2)
    row_sums = jnp.sum(vals, axis=-1, keepdims=True)      # (T, 1) lane reduce

    if ragged:
        # Only generated when N % tile_n != 0: stale/garbage rows in the last
        # tile could be NaN, and 0 * NaN would poison the masked dot below.
        i = pl.program_id(0)
        tile_n = dist_ref.shape[0]
        row_ids = i * tile_n + jax.lax.broadcasted_iota(
            jnp.int32, (tile_n, 1), 0)
        row_sums = jnp.where(row_ids < n_rows, row_sums, 0.0)

    # Fold the per-row "unknown" mask and the sublane reduction into one tiny
    # (1,T)@(T,1) matmul on the otherwise-idle MXU.  Mask entries for rows >= N
    # are 0, so padded tail rows never contribute.
    mask = mask_ref[0]                                     # (1, T) lane-dense
    partial = jnp.dot(mask, row_sums, preferred_element_type=jnp.float32)
    out_ref[...] = partial.reshape(1, 1, 1)


def _sublane(dtype):
    # 8 for 4-byte dtypes, 16 for 2-byte, 32 for 1-byte (sublane packing).
    return max(8, 32 // jnp.dtype(dtype).itemsize)


def _pick_tile_n(n, c, dtype, target_tile_bytes=8 << 20):
    itemsize = jnp.dtype(dtype).itemsize
    sub = _sublane(dtype)
    rows = target_tile_bytes // max(1, c * itemsize)
    rows = max(sub, (int(rows) // sub) * sub)
    if rows >= n:
        return n                     # single full-extent block is always legal
    return rows


def center_regularization_loss(distmat, target, margin, *, tile_n=None):
    """distmat: (N, C) float, target: (N,) int, margin: python float / 0-d."""
    n, c = distmat.shape
    itemsize = jnp.dtype(distmat.dtype).itemsize

    if tile_n is None:
        tile_n = _pick_tile_n(n, c, distmat.dtype)
    tile_n = int(min(tile_n, n))
    grid_n = pl.cdiv(n, tile_n)
    padded_n = grid_n * tile_n
    ragged = (n % tile_n) != 0

    # Lane-dense unknown-row mask (zero-padded over the ragged tail).  Replaces
    # the (N,1) int32 target column whose HBM layout is lane-padded to 128.
    unknown = (target < 0).astype(jnp.float32)
    if padded_n != n:
        unknown = jnp.pad(unknown, (0, padded_n - n))
    mask = unknown.reshape(grid_n, 1, tile_n)

    margin_arr = jnp.asarray([margin], dtype=jnp.float32)   # the nn.Parameter

    # Generation-aware VMEM budget: double-buffered native tile + f32 temps.
    tile_bytes = tile_n * c * itemsize
    tile_f32_bytes = tile_n * c * 4
    need = 2 * tile_bytes + 3 * tile_f32_bytes + (2 << 20)
    try:
        phys = int(pltpu.get_tpu_info().vmem_capacity_bytes)
    except Exception:
        phys = 64 << 20                                      # conservative (v7x)
    cap = min((phys * 3) // 4, 112 << 20)
    vmem_limit = int(min(max(need, 16 << 20), cap))

    kernel = functools.partial(_center_reg_kernel, n, ragged)

    partials = pl.pallas_call(
        kernel,
        out_shape=jax.ShapeDtypeStruct((grid_n, 1, 1), jnp.float32),
        grid=(grid_n,),
        in_specs=[
            pl.BlockSpec(memory_space=pltpu.SMEM),               # margin scalar
            pl.BlockSpec((tile_n, c), lambda i: (i, 0)),         # distmat tile
            pl.BlockSpec((1, 1, tile_n), lambda i: (i, 0, 0)),   # unknown mask
        ],
        out_specs=pl.BlockSpec((1, 1, 1), lambda i: (i, 0, 0)),  # partial sums
        compiler_params=pltpu.CompilerParams(
            dimension_semantics=("parallel",),
            vmem_limit_bytes=vmem_limit,
        ),
        cost_estimate=pl.CostEstimate(
            flops=4 * n * c + 2 * n,
            transcendentals=0,
            bytes_accessed=n * c * itemsize + padded_n * 4 + grid_n * 4 + 4,
        ),
    )(margin_arr, distmat, mask)

    return jnp.sum(partials)


def _reference(distmat, target, margin):
    unknown = (target < 0)[:, None]
    m2 = jnp.float32(margin) ** 2
    vals = jnp.maximum(m2 - distmat.astype(jnp.float32) ** 2, 0.0)
    return jnp.sum(jnp.where(unknown, vals, 0.0))


if __name__ == "__main__":
    key = jax.random.PRNGKey(0)
    k1, k2, k3, k4 = jax.random.split(key, 4)

    margin = 1.5   # module __init__ arg

    # Case 1: lane-dense C, N a multiple of the tile -> 4 pipelined grid steps.
    N1, C1 = 64, 128
    dist1 = jax.random.uniform(k1, (N1, C1), dtype=jnp.float32,
                               minval=0.0, maxval=3.0)
    tgt1 = jax.random.randint(k2, (N1,), minval=-2, maxval=C1, dtype=jnp.int32)
    loss1 = jax.block_until_ready(
        center_regularization_loss(dist1, tgt1, margin, tile_n=16))
    ref1 = _reference(dist1, tgt1, margin)
    assert jnp.allclose(loss1, ref1, rtol=1e-5, atol=1e-4), (loss1, ref1)

    # Case 2: ragged N (partial last tile) + bf16 distmat streamed natively.
    N2, C2 = 50, 128
    dist2 = jax.random.uniform(k3, (N2, C2), dtype=jnp.float32,
                               minval=0.0, maxval=3.0).astype(jnp.bfloat16)
    tgt2 = jax.random.randint(k4, (N2,), minval=-2, maxval=C2, dtype=jnp.int32)
    loss2 = jax.block_until_ready(
        center_regularization_loss(dist2, tgt2, margin, tile_n=16))
    ref2 = _reference(dist2, tgt2, margin)
    assert jnp.allclose(loss2, ref2, rtol=1e-5, atol=1e-3), (loss2, ref2)

    # Case 3: no unknown samples -> exactly 0.0 (matches the torch early return).
    all_known = jnp.abs(tgt1)
    loss0 = jax.block_until_ready(
        center_regularization_loss(dist1, all_known, margin, tile_n=16))
    assert loss0 == 0.0, loss0

    # Case 4: default tile sizing (single full-extent block, grid of 1).
    loss3 = jax.block_until_ready(
        center_regularization_loss(dist1, tgt1, margin))
    assert jnp.allclose(loss3, ref1, rtol=1e-5, atol=1e-4), (loss3, ref1)

    print("KERNEL_OK")
</pallas_src>

<mosaic_0001>
module attributes {stable_mosaic.version = 11 : i64} {
  func.func @_center_reg_kernel(%arg0: i32, %arg1: memref<1xf32, #tpu.memory_space<smem>>, %arg2: memref<16x128xf32, #tpu.memory_space<vmem>>, %arg3: memref<1x1x16xf32, #tpu.memory_space<vmem>>, %arg4: memref<1x1x1xf32, #tpu.memory_space<vmem>>) attributes {dimension_semantics = [#tpu.dimension_semantics<parallel>], iteration_bounds = array<i64: 4>, scalar_prefetch = 0 : i64, scratch_operands = 0 : i64, tpu.core_type = #tpu.core_type<tc>, window_params = [{transform_indices = @transform_0, window_bounds = array<i64: 1>}, {transform_indices = @transform_1, window_bounds = array<i64: 16, 128>}, {transform_indices = @transform_2, window_bounds = array<i64: 1, 1, 16>}, {transform_indices = @transform_3, window_bounds = array<i64: 1, 1, 1>}]} {
    %c0 = arith.constant 0 : index
    %0 = memref.load %arg1[%c0] : memref<1xf32, #tpu.memory_space<smem>>
    %1 = arith.mulf %0, %0 : f32
    %c0_0 = arith.constant 0 : index
    %c0_1 = arith.constant 0 : index
    %2 = vector.load %arg2[%c0_0, %c0_1] : memref<16x128xf32, #tpu.memory_space<vmem>>, vector<16x128xf32>
    %3 = arith.mulf %2, %2 : vector<16x128xf32>
    %4 = vector.broadcast %1 : f32 to vector<16x128xf32>
    %5 = arith.subf %4, %3 : vector<16x128xf32>
    %cst = arith.constant 0.000000e+00 : f32
    %6 = vector.broadcast %cst : f32 to vector<16x128xf32>
    %7 = arith.maximumf %5, %6 : vector<16x128xf32>
    %cst_2 = arith.constant dense<0.000000e+00> : vector<16xf32>
    %8 = vector.multi_reduction <add>, %7, %cst_2 [1] : vector<16x128xf32> to vector<16xf32>
    %9 = vector.shape_cast %8 : vector<16xf32> to vector<16x1xf32>
    %c0_3 = arith.constant 0 : index
    %c0_4 = arith.constant 0 : index
    %c0_5 = arith.constant 0 : index
    %10 = vector.load %arg3[%c0_3, %c0_4, %c0_5] : memref<1x1x16xf32, #tpu.memory_space<vmem>>, vector<1x1x16xf32>
    %11 = vector.shape_cast %10 : vector<1x1x16xf32> to vector<1x16xf32>
    %cst_6 = arith.constant dense<0.000000e+00> : vector<1x1xf32>
    %12 = tpu.matmul %11, %9, %cst_6 {dimension_numbers = #tpu.dot_dimension_numbers<[1], [0], [0], [1], [0, 0, 1, 1], [], []>} : vector<1x16xf32>, vector<16x1xf32>, vector<1x1xf32> -> vector<1x1xf32>
    %13 = vector.shape_cast %12 : vector<1x1xf32> to vector<1x1x1xf32>
    %c0_7 = arith.constant 0 : index
    %c0_8 = arith.constant 0 : index
    %c0_9 = arith.constant 0 : index
    %14 = vector.load %arg4[%c0_7, %c0_8, %c0_9] : memref<1x1x1xf32, #tpu.memory_space<vmem>>, vector<1x1x1xf32>
    tpu.vector_store %arg4[%c0_7, %c0_8, %c0_9], %13 {strides = array<i32>} : memref<1x1x1xf32, #tpu.memory_space<vmem>>, vector<1x1x1xf32>,
    return
  }
  func.func @transform_0(%arg0: i32) -> i32 {
    %c0_i32 = arith.constant 0 : i32
    %c0_i32_0 = arith.constant 0 : i32
    return %c0_i32 : i32
  }
  func.func @transform_1(%arg0: i32) -> (i32, i32) {
    %c0_i32 = arith.constant 0 : i32
    %c0_i32_0 = arith.constant 0 : i32
    return %arg0, %c0_i32 : i32, i32
  }
  func.func @transform_2(%arg0: i32) -> (i32, i32, i32) {
    %c0_i32 = arith.constant 0 : i32
    %c0_i32_0 = arith.constant 0 : i32
    %c0_i32_1 = arith.constant 0 : i32
    return %arg0, %c0_i32, %c0_i32_0 : i32, i32, i32
  }
  func.func @transform_3(%arg0: i32) -> (i32, i32, i32) {
    %c0_i32 = arith.constant 0 : i32
    %c0_i32_0 = arith.constant 0 : i32
    %c0_i32_1 = arith.constant 0 : i32
    return %arg0, %c0_i32, %c0_i32_0 : i32, i32, i32
  }
}

</mosaic_0001>

<bundles_post_ra>
// kernel: tpu_custom_call.1
= control target key start
LH: loop header
LB: loop body
LE: loop exit
PB: predicated region body
PF: predicated region fallthrough
CT: control target
= control target key end

     0   :  { %s638_s0 = inlined_call_operand.<no memory space> [shape: f32[1], index: 0, kind: input, shape index: {}]   ;;  %s639_s1 = inlined_call_operand.hbm [shape: f32[64,128], index: 1, kind: input, shape index: {}]   ;;  %s640_s2 = inlined_call_operand.vmem [shape: f32[4,1,16], index: 2, kind: input, shape index: {}]   ;;  %s641_s3 = inlined_call_operand.vmem [shape: f32[4,1,1], index: 3, kind: output, shape index: {}]  }
   0x1   :  { %8 = sst [smem:[#allocation2]] %s638_s0 }
   0x2   :  { %9 = vsyncpa [#allocation4], 0 }
   0x3   :  { %11 = vsyncpa [#allocation4 + $0x1], 0  ;;  %s527_s14 = smov 0   ;;  %s529_s15 = smov 0  }
   0x4   :  { %s531_s16 = smov 0   ;;  %s533_s17 = smov 0  }
   0x5 LB: > { %s546_s0 = sadd.s32 4294967295, %s496_s17   ;;  %s549_s18 = sadd.s32 1, %s496_s17   ;;  %s496_s17 = sphi %s533_s17, %s648_s17   ;;  %s492_s16 = sphi %s531_s16, %s647_s16   ;;  %s488_s15 = sphi %s529_s15, %s646_s15   ;;  %s484_s14 = sphi %s527_s14, %s645_s14  }
   0x6   : > { %s42_s19 = ssub.s32 %s496_s17, %s549_s18  ;;  %s45_s20 = sadd.s32 1, %s492_s16 }
   0x7   : > { %p43_p0 = scmp.eq.s32.totalorder %s42_s19, 0  ;;  %p52_p1 = scmp.ne.s32.totalorder %s492_s16, %s488_s15 }
   0x8   : > { %p53_p2 = scmp.eq.s32.totalorder %s496_s17, 0  ;;  %p58_p3 = scmp.ne.s32.totalorder %s488_s15, %s484_s14 }
   0x9   : > { %s559_s21 = scalar_select %p43_p0, %s492_s16, %s45_s20  }
   0xa   : > { %p54_p4 = por %p53_p2, %p52_p1  ;;  %p59_p5 = scmp.eq.s32.totalorder %s546_s0, 0 }
   0xb   : > { %p394_p6 = scmp.lt.s32.totalorder %s496_s17, 4  ;;  %s137_s23 = sand.u32 1, %s492_s16  }
   0xc   : > { %p563_p7 = por %p59_p5, %p58_p3  ;;  %s366_s24 = sshll.u32 %s137_s23, 4 }
   0xd   : > { %s374_s25 = sshll.u32 %s496_s17, 8  ;;  %s141_s29 = scalar_lea.vmem [#allocation3], %s366_s24 }
   0xe   : > { %s572_s28 = scalar_lea.hbm %s639_s1, %s374_s25  ;;  %s148_s30 = sshll.u32 %s141_s29, 4  ;;  %s574_s30 = int_to_ptr.vmem [resolvable:$true] %s148_s30 }
   0xf   : > { %p576_p8 = pnand %p394_p6, %p54_p4  ;;  %s581_s5 = scalar_lea.sflag [#allocation4], %s137_s23 }
  0x10   : > { %s432_s6 = scalar_lea.hbm %s572_s28, 256  ;;  %s437_s9 = scalar_lea.hbm %s639_s1, 1024 }
  0x11   : > { %p433_p10 = scmp.ne.s32.totalorder %s572_s28, %s432_s6  ;;  %p434_p11 = pneg %p576_p8 }
  0x12   : > { %p438_p0 = scmp.lt.u32.totalorder %s572_s28, %s639_s1  ;;  %p439_p1 = scmp.lt.u32.totalorder %s437_s9, %s432_s6 }
  0x13   : > { %p435_p12 = pnand %p434_p11, %p433_p10  ;;  %p441_p3 = scmp.lt.u32.totalorder %s432_s6, %s572_s28 }
  0x14   : > { %p440_p2 = por %p439_p1, %p438_p0 }
  0x15   : > { %p436_p13 = pneg %p435_p12 }
  0x16   : > { %p442_p4 = por %p441_p3, %p440_p2 }
  0x18   : > { %p443_p5 = pnand %p442_p4, %p436_p13 }
  0x1a   : > { %446 = shalt.err (!%p443_p5)
}
  0x1b   : > { %s447_s12 = scalar_lea.vmem %s574_s30, 256  ;;  %s498_s13 = smov [#allocation3]  }
  0x1c   : > { %p448_p6 = scmp.ne.s32.totalorder %s574_s30, %s447_s12  ;;  %s452_s14 = sshll.u32 %s498_s13, 4  ;;  %s453_s14 = int_to_ptr.vmem [resolvable:$false] %s452_s14 }
  0x1d   : > { %s454_s19 = scalar_lea.vmem %s453_s14, 512  ;;  %p455_p9 = scmp.lt.s32.totalorder %s574_s30, %s453_s14 }
  0x1e   : > { %p450_p10 = pnand %p448_p6, %p434_p11  ;;  %p456_p0 = scmp.lt.s32.totalorder %s454_s19, %s447_s12 }
  0x20   : > { %p451_p12 = pneg %p450_p10  ;;  %p457_p1 = por %p456_p0, %p455_p9 }
  0x22   : > { %p458_p2 = pnand %p457_p1, %p451_p12 }
  0x24   : > { %461 = shalt.err (!%p458_p2)
}
  0x25   : > { %s499_s20 = smov 128   ;;  %s500_s23 = smov 8  }
  0x26   : > { %393 = dma.hbm_to_vmem [thread:$0]  (!%p576_p8), %s572_s28, 256, %s574_s30, %s581_s5, %s499_s20, %s499_s20, %s500_s23  }
  0x27   : > { %p162_p11 = scmp.lt.s32.totalorder %s496_s17, 5  ;;  %p644_p13 = scmp.ge.s32.totalorder %s496_s17, 1 }
  0x29   : > { %p163_p3 = pnand %p644_p13, %p162_p11 }
  0x2a   : > { %s168_s24 = sand.u32 (!%p163_p3), 1, %s488_s15  }
  0x2b   : > { %166 = sbr.rel (%p163_p3) target bundleno = 428 (0x1ac), region = 32  ;;  %s370_s25 = sshll.u32 (!%p163_p3), %s168_s24, 4 }
  0x2c   : > { %s169_s26 = scalar_lea.sflag (!%p163_p3), [#allocation4], %s168_s24  ;;  %s172_s27 = scalar_lea.vmem (!%p163_p3), [#allocation3], %s370_s25 }
  0x32   : > { %479 = dma.done.wait (%p563_p7), %s169_s26, 256  }
  0x33   : > { %481 = vsyncadd (%p563_p7), %s169_s26, 4294967040  ;;  %s203_s29 = sld [smem:[#allocation2]]  ;;  %v205_v0 = vld [vmem:[%s172_s27] sm:$0xff]  ;;  %v206_v1 = vld [vmem:[%s172_s27 + $0x8] sm:$0xff]  ;;  %v501_v9 = vmov 0.0|0.0   ;;  %vm502_vm0 = vmmov 0  }
  0x34   : > { %v207_v2 = vmul.f32 %v205_v0, %v205_v0  ;;  %v208_v3 = vmul.f32 %v206_v1, %v206_v1  ;;  %385 = vmatprep.subr.bf16.mxu0 %v501_v9  ;;  %v503_v10 = vmov 0.0   ;;  %p197_p7 = scmp.lt.s32.totalorder %s546_s0, 3  ;;  %vm219_vm1 = vcmask 130048  }
  0x35   : > { %382 = vmatprep.mubr.msk.f32.mxu0 %vm502_vm0, %v503_v10  ;;  %vm293_vm2 = vcmask 0  }
  0x36   : > { %s650_s0 = smov (!%p197_p7, %s546_s0), 3 }
  0x37   : > { %s199_s28 = scalar_lea.vmem %s640_s2, %s650_s0  ;;  %s202_s5 = scalar_lea.vmem %s641_s3, %s650_s0 }
  0x38   : > { %v218_v14 = vld [vmem:[%s199_s28] sm:$0x1] }
  0x39   : > { %s204_s6 = smul.f32 %s203_s29, %s203_s29 }
  0x3b   : > { %v209_v4 = vstv %s204_s6 }
  0x3c   : > { %v210_v5 = vsub.f32 %v209_v4, %v207_v2  ;;  %v211_v6 = vsub.f32 %v209_v4, %v208_v3 }
  0x3e   : > { %v212_v7 = vmax.f32 %v210_v5, 0.0  ;;  %v213_v8 = vmax.f32 %v211_v6, 0.0 }
  0x40   : > { %214 = vadd.xlane.f32.xlu0 %v212_v7 }
  0x44   : > { %216 = vadd.xlane.f32.xlu0 %v213_v8 }
  0xcd   : > { %v215_v11 = vpop.xlane.xlu0 %214 }
  0xd1   : > { %v217_v12 = vpop.xlane.xlu0 %216 }
  0xd2   : > { %v386_v13 = vpack.c.bf16 %v217_v12, %v215_v11 }
  0xd4   : > { %387 = vmatpush3.bf16.msra.mxu0 %v386_v13 }
  0xd7   : > { %383 = vmatmul.mubr.msk.f32.vlgmr.msra.gmra.mrb[0].mxu0 %vm219_vm1, %v218_v14 }
 0x1aa   : > { %v289_v15 = vpop.f32.mrb[0].mxu0 }
 0x1ab   : > { %294 = vst.msk [vmem:[%s202_s5] sm:$0x1] %vm293_vm2, %v289_v15  ;;  %v384_v16 = vpop.f32.mrb[1].mxu0 }
 0x1ac PF: > { %p14_p8 = scmp.ge.s32.totalorder %s549_s18, 6   ;;  %s645_s14 = smov %s488_s15 }
 0x1ad   : > { %s646_s15 = smov %s492_s16  ;;  %s647_s16 = smov %s559_s21 }
 0x1ae   : > { %s648_s17 = smov %s549_s18  ;;  %16 = sbr.rel (!%p14_p8) target bundleno = 5 (0x5), region = 75 }
 0x1b5   :  { %312 = vsyncpa [#allocation4], 1 }
 0x1b6   :  { %314 = vsyncpa [#allocation4 + $0x1], 1 }

</bundles_post_ra>
